<compile_context>
chip_gen: v7x
topology: tpu7x:2x2x1
jax: 0.10.0
libtpu: 0.0.40
codegen_flags: <defaults>
</compile_context>

<pallas_src>
import functools

import jax
import jax.numpy as jnp
from jax.experimental import pallas as pl
from jax.experimental.pallas import tpu as pltpu


def _distill_kernel(fs_ref, ft_ref, out_ref, gs_acc, gt_acc, *, tm, nk_s, nk_t):
    i = pl.program_id(0)          # Gram row-block index ("parallel")
    k = pl.program_id(1)          # feature (reduction) block index ("arbitrary")
    nk = pl.num_programs(1)

    row = pl.multiple_of(i * tm, 128)        # aligned row-block start
    dn = (((1,), (1,)), ((), ()))            # NT matmul: contract last dims

    def gs_partial():
        return jax.lax.dot_general(
            fs_ref[pl.ds(row, tm), :], fs_ref[...], dn,
            preferred_element_type=jnp.float32)

    def gt_partial():
        return jax.lax.dot_general(
            ft_ref[pl.ds(row, tm), :], ft_ref[...], dn,
            preferred_element_type=jnp.float32)

    # First K step writes the accumulators directly (no explicit zero-fill).
    @pl.when(k == 0)
    def _():
        gs_acc[...] = gs_partial()
        gt_acc[...] = gt_partial()

    # Later K steps accumulate, each tensor only over its own feature range
    # (the narrower tensor's all-zero padded K slabs are skipped entirely).
    if nk_s > 1:
        cond_s = (k > 0) if nk_s == nk else jnp.logical_and(k > 0, k < nk_s)

        @pl.when(cond_s)
        def _():
            gs_acc[...] += gs_partial()

    if nk_t > 1:
        cond_t = (k > 0) if nk_t == nk else jnp.logical_and(k > 0, k < nk_t)

        @pl.when(cond_t)
        def _():
            gt_acc[...] += gt_partial()

    # Epilogue: fused normalize + squared-diff reduction in algebraic form.
    @pl.when(k == nk - 1)
    def _():
        gs = gs_acc[...]
        gt = gt_acc[...]
        eps = jnp.float32(1e-12)
        ss = jnp.sum(gs * gs, axis=-1, keepdims=True)     # [tm, 1]
        tt = jnp.sum(gt * gt, axis=-1, keepdims=True)
        st = jnp.sum(gs * gt, axis=-1, keepdims=True)
        # torch.nn.functional.normalize: x / max(||x||, eps)
        inv_s = pl.reciprocal(jnp.maximum(jnp.sqrt(ss), eps), approx=False)
        inv_t = pl.reciprocal(jnp.maximum(jnp.sqrt(tt), eps), approx=False)
        # Keep ss*inv_s^2 / tt*inv_t^2 (do NOT fold to 1): padded rows -> 0.
        row_loss = (ss * inv_s * inv_s + tt * inv_t * inv_t
                    - 2.0 * st * (inv_s * inv_t))
        out_ref[...] = jnp.full(out_ref.shape, jnp.sum(row_loss), jnp.float32)


def _round_up(x, m):
    return (x + m - 1) // m * m


def _pad_to(x, rows, cols):
    r, c = x.shape
    if (r, c) == (rows, cols):
        return x
    return jnp.pad(x, ((0, rows - r), (0, cols - c)))


def _fit_tile(t, dim):
    """Largest multiple of 128 that is <= t and divides dim (dim % 128 == 0)."""
    t = min(t, dim)
    while dim % t:
        t -= 128
    return t


def _physical_vmem_bytes():
    try:
        info = pltpu.get_tpu_info()
        v = getattr(info, "vmem_capacity_bytes", None)
        if v:
            return int(v)
    except Exception:
        pass
    return 64 * 1024 * 1024   # conservative default (v7x per-TC VMEM)


def distill_per_one_loss(f_s, f_t, *, tm=512, tk=512, cast_to_bf16=False):
    """Pallas equivalent of Ours_Distill_per_one.forward((f_s, f_t)) -> scalar."""
    assert f_s.ndim == 2 and f_t.ndim == 2 and f_s.shape[0] == f_t.shape[0]
    bsz = f_s.shape[0]

    # long.detach() in the PyTorch module.
    f_t = jax.lax.stop_gradient(f_t)

    # Optional bandwidth/MXU optimization (changes numerics slightly).
    if cast_to_bf16:
        f_s = f_s.astype(jnp.bfloat16)
        f_t = f_t.astype(jnp.bfloat16)

    # Pad batch and EACH feature dim to its own multiple of 128.  Padding is
    # loss-preserving: padded rows give zero Gram rows whose norm clamps to
    # eps -> contribute exactly 0 (we divide by the ORIGINAL bsz^2).
    b_pad = _round_up(bsz, 128)
    d_pad_s = _round_up(f_s.shape[1], 128)
    d_pad_t = _round_up(f_t.shape[1], 128)
    fs_p = _pad_to(f_s, b_pad, d_pad_s)
    ft_p = _pad_to(f_t, b_pad, d_pad_t)
    itemsize = max(jnp.dtype(fs_p.dtype).itemsize, jnp.dtype(ft_p.dtype).itemsize)

    tm = _fit_tile(tm, b_pad)
    tk_s = _fit_tile(tk, d_pad_s)
    tk_t = _fit_tile(tk, d_pad_t)

    # VMEM policy scales with the chip generation (v5e/v6e: 128 MiB physical,
    # v7x: 64 MiB per TC -> keep headroom for compiler scratch).
    phys_vmem = _physical_vmem_bytes()
    budget = min(phys_vmem - 24 * 1024 * 1024, int(phys_vmem * 0.75))

    def vmem_est(tm_, tks_, tkt_):
        acc = 2 * tm_ * b_pad * 4                       # f32 Gram accumulators
        slabs = 2 * b_pad * (tks_ + tkt_) * itemsize    # double-buffered slabs
        return acc + slabs

    # Shrink tk first (tm controls HBM slab re-streaming ~ B/tm), then tm.
    while vmem_est(tm, tk_s, tk_t) > budget and max(tk_s, tk_t) > 128:
        if tk_s >= tk_t and tk_s > 128:
            tk_s = _fit_tile(tk_s - 128, d_pad_s)
        else:
            tk_t = _fit_tile(tk_t - 128, d_pad_t)
    while vmem_est(tm, tk_s, tk_t) > budget and tm > 128:
        tm = _fit_tile(tm - 128, b_pad)
    # TODO(synk): for batches so large that a single [B, 128] slab no longer
    # fits in VMEM, a third grid axis over the Gram column dim is needed.

    vmem_limit = int(min(phys_vmem - 8 * 1024 * 1024,
                         max(32 * 1024 * 1024,
                             vmem_est(tm, tk_s, tk_t) + 16 * 1024 * 1024)))

    n_i = b_pad // tm
    nk_s = d_pad_s // tk_s
    nk_t = d_pad_t // tk_t
    nk = max(nk_s, nk_t)
    grid = (n_i, nk)

    cost = pl.CostEstimate(
        flops=2 * b_pad * b_pad * (d_pad_s + d_pad_t),
        transcendentals=2 * b_pad,
        bytes_accessed=(n_i * b_pad * (d_pad_s + d_pad_t) * itemsize
                        + n_i * 8 * 128 * 4),
    )

    kernel = functools.partial(_distill_kernel, tm=tm, nk_s=nk_s, nk_t=nk_t)

    def _slab_map(nk_x):
        if nk_x == nk:
            return lambda i, k: (0, k)
        last = nk_x - 1
        # Clamp: block index stops changing past nk_x-1 -> no extra DMA.
        return lambda i, k: (0, jnp.minimum(k, last))

    partials = pl.pallas_call(
        kernel,
        out_shape=jax.ShapeDtypeStruct((n_i, 8, 128), jnp.float32),
        grid=grid,
        in_specs=[
            pl.BlockSpec((b_pad, tk_s), _slab_map(nk_s)),   # f_s full-batch K slab
            pl.BlockSpec((b_pad, tk_t), _slab_map(nk_t)),   # f_t full-batch K slab
        ],
        out_specs=pl.BlockSpec((1, 8, 128), lambda i, k: (i, 0, 0)),
        scratch_shapes=[
            pltpu.VMEM((tm, b_pad), jnp.float32),   # G_s row-slab accumulator
            pltpu.VMEM((tm, b_pad), jnp.float32),   # G_t row-slab accumulator
        ],
        compiler_params=pltpu.CompilerParams(
            # Row-block axis is independent (per-block partial output) -> it
            # can be sharded across v7x's two TensorCores.  The K reduction
            # axis stays sequential.
            dimension_semantics=("parallel", "arbitrary"),
            vmem_limit_bytes=vmem_limit,
        ),
        cost_estimate=cost,
    )(fs_p, ft_p)

    return jnp.sum(partials[:, 0, 0]) / jnp.float32(bsz * bsz)


def _reference(f_s, f_t):
    f_s = f_s.astype(jnp.float32)
    f_t = f_t.astype(jnp.float32)
    g_s = f_s @ f_s.T
    g_t = f_t @ f_t.T
    eps = 1e-12
    g_s = g_s / jnp.maximum(jnp.linalg.norm(g_s, axis=1, keepdims=True), eps)
    g_t = g_t / jnp.maximum(jnp.linalg.norm(g_t, axis=1, keepdims=True), eps)
    d = g_t - g_s
    return jnp.sum(d * d) / (f_s.shape[0] ** 2)


if __name__ == "__main__":
    key = jax.random.PRNGKey(0)
    k1, k2 = jax.random.split(key)
    bsz, dim_s, dim_t = 8, 32, 48          # small "short"/"long" feature matrices
    f_short = jax.random.normal(k1, (bsz, dim_s), dtype=jnp.float32)
    f_long = jax.random.normal(k2, (bsz, dim_t), dtype=jnp.float32)

    # f32 path: matches the reference tightly.
    loss = jax.block_until_ready(distill_per_one_loss(f_short, f_long))
    ref = _reference(f_short, f_long)
    assert jnp.allclose(loss, ref, rtol=1e-4, atol=1e-5), (loss, ref)

    # bf16 path: operands feed the MXU in bf16 with f32 accumulation.
    loss_bf16 = jax.block_until_ready(
        distill_per_one_loss(f_short.astype(jnp.bfloat16),
                             f_long.astype(jnp.bfloat16)))
    ref_bf16 = _reference(f_short.astype(jnp.bfloat16),
                          f_long.astype(jnp.bfloat16))
    assert jnp.allclose(loss_bf16, ref_bf16, rtol=1e-1, atol=1e-3), (loss_bf16, ref_bf16)

    print("KERNEL_OK")
</pallas_src>

<mosaic_0001>
module attributes {stable_mosaic.version = 11 : i64} {
  func.func @_distill_kernel(%arg0: i32, %arg1: i32, %arg2: memref<128x128xf32, #tpu.memory_space<vmem>>, %arg3: memref<128x128xf32, #tpu.memory_space<vmem>>, %arg4: memref<1x8x128xf32, #tpu.memory_space<vmem>>, %arg5: memref<128x128xf32, #tpu.memory_space<vmem>>, %arg6: memref<128x128xf32, #tpu.memory_space<vmem>>) attributes {dimension_semantics = [#tpu.dimension_semantics<parallel>, #tpu.dimension_semantics<arbitrary>], iteration_bounds = array<i64: 1, 1>, scalar_prefetch = 0 : i64, scratch_operands = 2 : i64, tpu.core_type = #tpu.core_type<tc>, window_params = [{transform_indices = @transform_0, window_bounds = array<i64: 128, 128>}, {transform_indices = @transform_1, window_bounds = array<i64: 128, 128>}, {transform_indices = @transform_2, window_bounds = array<i64: 1, 8, 128>}]} {
    %c128_i32 = arith.constant 128 : i32
    %0 = arith.muli %arg0, %c128_i32 : i32
    %1 = tpu.assume_multiple %0, 128 : i32
    %c0_i32 = arith.constant 0 : i32
    %2 = arith.cmpi eq, %arg1, %c0_i32 : i32
    %3 = arith.extui %2 : i1 to i32
    %c0_i32_0 = arith.constant 0 : i32
    %4 = arith.cmpi ne, %3, %c0_i32_0 : i32
    scf.if %4 {
      %8 = arith.index_cast %1 : i32 to index
      %c0 = arith.constant 0 : index
      %9 = vector.load %arg2[%8, %c0] : memref<128x128xf32, #tpu.memory_space<vmem>>, vector<128x128xf32>
      %c0_3 = arith.constant 0 : index
      %c0_4 = arith.constant 0 : index
      %10 = vector.load %arg2[%c0_3, %c0_4] : memref<128x128xf32, #tpu.memory_space<vmem>>, vector<128x128xf32>
      %cst = arith.constant dense<0.000000e+00> : vector<128x128xf32>
      %11 = tpu.matmul %9, %10, %cst {dimension_numbers = #tpu.dot_dimension_numbers<[1], [1], [0], [0], [0, 0, 1, 0], [], []>} : vector<128x128xf32>, vector<128x128xf32>, vector<128x128xf32> -> vector<128x128xf32>
      %c0_5 = arith.constant 0 : index
      %c0_6 = arith.constant 0 : index
      %12 = vector.load %arg5[%c0_5, %c0_6] : memref<128x128xf32, #tpu.memory_space<vmem>>, vector<128x128xf32>
      tpu.vector_store %arg5[%c0_5, %c0_6], %11 {strides = array<i32>} : memref<128x128xf32, #tpu.memory_space<vmem>>, vector<128x128xf32>,
      %13 = arith.index_cast %1 : i32 to index
      %c0_7 = arith.constant 0 : index
      %14 = vector.load %arg3[%13, %c0_7] : memref<128x128xf32, #tpu.memory_space<vmem>>, vector<128x128xf32>
      %c0_8 = arith.constant 0 : index
      %c0_9 = arith.constant 0 : index
      %15 = vector.load %arg3[%c0_8, %c0_9] : memref<128x128xf32, #tpu.memory_space<vmem>>, vector<128x128xf32>
      %cst_10 = arith.constant dense<0.000000e+00> : vector<128x128xf32>
      %16 = tpu.matmul %14, %15, %cst_10 {dimension_numbers = #tpu.dot_dimension_numbers<[1], [1], [0], [0], [0, 0, 1, 0], [], []>} : vector<128x128xf32>, vector<128x128xf32>, vector<128x128xf32> -> vector<128x128xf32>
      %c0_11 = arith.constant 0 : index
      %c0_12 = arith.constant 0 : index
      %17 = vector.load %arg6[%c0_11, %c0_12] : memref<128x128xf32, #tpu.memory_space<vmem>>, vector<128x128xf32>
      tpu.vector_store %arg6[%c0_11, %c0_12], %16 {strides = array<i32>} : memref<128x128xf32, #tpu.memory_space<vmem>>, vector<128x128xf32>,
    } else {
    }
    %c0_i32_1 = arith.constant 0 : i32
    %5 = arith.cmpi eq, %arg1, %c0_i32_1 : i32
    %6 = arith.extui %5 : i1 to i32
    %c0_i32_2 = arith.constant 0 : i32
    %7 = arith.cmpi ne, %6, %c0_i32_2 : i32
    scf.if %7 {
      %c0 = arith.constant 0 : index
      %c0_3 = arith.constant 0 : index
      %8 = vector.load %arg5[%c0, %c0_3] : memref<128x128xf32, #tpu.memory_space<vmem>>, vector<128x128xf32>
      %c0_4 = arith.constant 0 : index
      %c0_5 = arith.constant 0 : index
      %9 = vector.load %arg6[%c0_4, %c0_5] : memref<128x128xf32, #tpu.memory_space<vmem>>, vector<128x128xf32>
      %10 = arith.mulf %8, %8 : vector<128x128xf32>
      %cst = arith.constant dense<0.000000e+00> : vector<128xf32>
      %11 = vector.multi_reduction <add>, %10, %cst [1] : vector<128x128xf32> to vector<128xf32>
      %12 = vector.shape_cast %11 : vector<128xf32> to vector<128x1xf32>
      %13 = arith.mulf %9, %9 : vector<128x128xf32>
      %cst_6 = arith.constant dense<0.000000e+00> : vector<128xf32>
      %14 = vector.multi_reduction <add>, %13, %cst_6 [1] : vector<128x128xf32> to vector<128xf32>
      %15 = vector.shape_cast %14 : vector<128xf32> to vector<128x1xf32>
      %16 = arith.mulf %8, %9 : vector<128x128xf32>
      %cst_7 = arith.constant dense<0.000000e+00> : vector<128xf32>
      %17 = vector.multi_reduction <add>, %16, %cst_7 [1] : vector<128x128xf32> to vector<128xf32>
      %18 = vector.shape_cast %17 : vector<128xf32> to vector<128x1xf32>
      %19 = math.sqrt %12 : vector<128x1xf32>
      %cst_8 = arith.constant 9.99999996E-13 : f32
      %20 = vector.broadcast %cst_8 : f32 to vector<128x1xf32>
      %21 = arith.maximumf %19, %20 : vector<128x1xf32>
      %22 = tpu.reciprocal %21 : vector<128x1xf32> -> vector<128x1xf32>
      %23 = math.sqrt %15 : vector<128x1xf32>
      %cst_9 = arith.constant 9.99999996E-13 : f32
      %24 = vector.broadcast %cst_9 : f32 to vector<128x1xf32>
      %25 = arith.maximumf %23, %24 : vector<128x1xf32>
      %26 = tpu.reciprocal %25 : vector<128x1xf32> -> vector<128x1xf32>
      %27 = arith.mulf %12, %22 : vector<128x1xf32>
      %28 = arith.mulf %27, %22 : vector<128x1xf32>
      %29 = arith.mulf %15, %26 : vector<128x1xf32>
      %30 = arith.mulf %29, %26 : vector<128x1xf32>
      %31 = arith.addf %28, %30 : vector<128x1xf32>
      %cst_10 = arith.constant 2.000000e+00 : f32
      %32 = vector.broadcast %cst_10 : f32 to vector<128x1xf32>
      %33 = arith.mulf %32, %18 : vector<128x1xf32>
      %34 = arith.mulf %22, %26 : vector<128x1xf32>
      %35 = arith.mulf %33, %34 : vector<128x1xf32>
      %36 = arith.subf %31, %35 : vector<128x1xf32>
      %37 = vector.shape_cast %36 : vector<128x1xf32> to vector<1x128x1xf32>
      %cst_11 = arith.constant dense<0.000000e+00> : vector<1xf32>
      %38 = vector.multi_reduction <add>, %37, %cst_11 [1, 2] : vector<1x128x1xf32> to vector<1xf32>
      %39 = vector.shape_cast %38 : vector<1xf32> to vector<1x1x1xf32>
      %40 = vector.extract %39[0, 0, 0] : f32 from vector<1x1x1xf32>
      %41 = vector.broadcast %40 : f32 to vector<1x8x128xf32>
      %c0_12 = arith.constant 0 : index
      %c0_13 = arith.constant 0 : index
      %c0_14 = arith.constant 0 : index
      %42 = vector.load %arg4[%c0_12, %c0_13, %c0_14] : memref<1x8x128xf32, #tpu.memory_space<vmem>>, vector<1x8x128xf32>
      tpu.vector_store %arg4[%c0_12, %c0_13, %c0_14], %41 {strides = array<i32>} : memref<1x8x128xf32, #tpu.memory_space<vmem>>, vector<1x8x128xf32>,
    } else {
    }
    return
  }
  func.func @transform_0(%arg0: i32, %arg1: i32) -> (i32, i32) {
    %c0_i32 = arith.constant 0 : i32
    %c0_i32_0 = arith.constant 0 : i32
    return %c0_i32, %arg1 : i32, i32
  }
  func.func @transform_1(%arg0: i32, %arg1: i32) -> (i32, i32) {
    %c0_i32 = arith.constant 0 : i32
    %c0_i32_0 = arith.constant 0 : i32
    return %c0_i32, %arg1 : i32, i32
  }
  func.func @transform_2(%arg0: i32, %arg1: i32) -> (i32, i32, i32) {
    %c0_i32 = arith.constant 0 : i32
    %c0_i32_0 = arith.constant 0 : i32
    %c0_i32_1 = arith.constant 0 : i32
    return %arg0, %c0_i32, %c0_i32_0 : i32, i32, i32
  }
}

</mosaic_0001>

<bundles_post_ra>
// kernel: tpu_custom_call.1
= control target key start
LH: loop header
LB: loop body
LE: loop exit
PB: predicated region body
PF: predicated region fallthrough
CT: control target
= control target key end

     0   :  { %7 = vsyncpa [#allocation5], 0  ;;  %s2276_s0 = inlined_call_operand.hbm [shape: f32[128,128], index: 0, kind: input, shape index: {}]   ;;  %s2277_s1 = inlined_call_operand.hbm [shape: f32[128,128], index: 1, kind: input, shape index: {}]   ;;  %s2278_s2 = inlined_call_operand.hbm [shape: f32[1,8,128], index: 2, kind: output, shape index: {}]  }
   0x1   :  { %8 = vsyncpa [#allocation8], 0 }
   0x2   :  { %9 = vsyncpa [#allocation6], 0  ;;  %s1547_s9 = smov [#allocation4]   ;;  %s1475_s13 = scalar_lea.hbm %s2276_s0, 2048 }
   0x3   :  { %s15_s10 = sshll.u32 %s1547_s9, 4  ;;  %p1476_p0 = scmp.ne.s32.totalorder %s2276_s0, %s1475_s13  ;;  %s16_s10 = int_to_ptr.vmem [resolvable:$true] %s15_s10 }
   0x4   :  { %p1479_p1 = scmp.lt.u32.totalorder %s1475_s13, %s2276_s0 }
   0x6   :  { %p1481_p2 = pnand %p1479_p1, %p1476_p0 }
   0x8   :  { %1484 = shalt.err (!%p1481_p2)
}
   0x9   :  { %s1485_s18 = scalar_lea.vmem %s16_s10, 2048  ;;  %p1490_p4 = scmp.lt.s32.totalorder %s16_s10, %s16_s10 }
   0xa   :  { %p1486_p3 = scmp.ne.s32.totalorder %s16_s10, %s1485_s18  ;;  %p1491_p5 = scmp.lt.s32.totalorder %s1485_s18, %s1485_s18 }
   0xc   :  { %p1492_p6 = por %p1491_p5, %p1490_p4 }
   0xe   :  { %p1493_p7 = pnand %p1492_p6, %p1486_p3 }
  0x10   :  { %1496 = shalt.err (!%p1493_p7)
}
  0x11   :  { %s1548_s19 = smov 128   ;;  %s1549_s20 = smov 8  }
  0x12   :  { %21 = dma.hbm_to_vmem [thread:$0]  %s2276_s0, 2048, %s16_s10, [#allocation5], %s1548_s19, %s1548_s19, %s1549_s20  }
  0x13   :  { %s1550_s23 = smov [#allocation7]   ;;  %s1497_s27 = scalar_lea.hbm %s2277_s1, 2048 }
  0x14   :  { %s27_s24 = sshll.u32 %s1550_s23, 4  ;;  %p1498_p8 = scmp.ne.s32.totalorder %s2277_s1, %s1497_s27  ;;  %s28_s24 = int_to_ptr.vmem [resolvable:$true] %s27_s24 }
  0x15   :  { %p1501_p9 = scmp.lt.u32.totalorder %s1497_s27, %s2277_s1 }
  0x17   :  { %p1503_p10 = pnand %p1501_p9, %p1498_p8 }
  0x19   :  { %1506 = shalt.err (!%p1503_p10)
}
  0x1a   :  { %s1507_s4 = scalar_lea.vmem %s28_s24, 2048  ;;  %p1512_p12 = scmp.lt.s32.totalorder %s28_s24, %s28_s24 }
  0x1b   :  { %p1508_p11 = scmp.ne.s32.totalorder %s28_s24, %s1507_s4  ;;  %p1513_p13 = scmp.lt.s32.totalorder %s1507_s4, %s1507_s4 }
  0x1d   :  { %p1514_p0 = por %p1513_p13, %p1512_p12 }
  0x1f   :  { %p1515_p1 = pnand %p1514_p0, %p1508_p11 }
  0x21   :  { %1518 = shalt.err (!%p1515_p1)
}
  0x22   :  { %33 = dma.hbm_to_vmem [thread:$0]  %s2277_s1, 2048, %s28_s24, [#allocation8], %s1548_s19, %s1548_s19, %s1549_s20  }
  0x23   :  { %1541 = dma.done.wait [#allocation5], 2048  }
  0x24   :  { %1542 = vsyncadd [#allocation5], 4294965248 }
  0x25   :  { %1543 = dma.done.wait [#allocation8], 2048  }
  0x26   :  { %1544 = vsyncadd [#allocation8], 4294965248  ;;  %v62_v0 = vld [vmem:[#allocation4] sm:$0xff]  ;;  %v1591_v1 = vld [vmem:[#allocation4 + $0x8] sm:$0xff]  ;;  %s1551_s1 = smov [#allocation9]  }
  0x27   :  { %v256_v2 = vld [vmem:[#allocation7] sm:$0xff]  ;;  %v1276_v3 = vpack.c.bf16 %v1591_v1, %v62_v0  ;;  %v1594_v4 = vld [vmem:[#allocation7 + $0x8] sm:$0xff]  ;;  %v1596_v5 = vld [vmem:[#allocation4 + $0x10] sm:$0xff]  ;;  %1196 = vmatprep.mubr.f32.mxu0 %v62_v0  ;;  %s1090_s6 = sshll.u32 %s1551_s1, 4  ;;  %s1091_s6 = int_to_ptr.vmem [resolvable:$true] %s1090_s6 }
  0x28   :  { %v1598_v6 = vld [vmem:[#allocation4 + $0x18] sm:$0xff]  ;;  %1252 = vmatprep.mubr.f32.mxu1 %v256_v2  ;;  %v1308_v7 = vpack.c.bf16 %v1594_v4, %v256_v2  ;;  %v1603_v9 = vld [vmem:[#allocation7 + $0x10] sm:$0xff]  ;;  %v1609_v12 = vld [vmem:[#allocation4 + $0x20] sm:$0xff]  ;;  %s1519_s8 = scalar_lea.vmem %s1091_s6, 128  ;;  %p1524_p3 = scmp.lt.s32.totalorder %s1091_s6, %s1091_s6 }
  0x29   :  { %v1280_v8 = vpack.c.bf16 %v1598_v6, %v1596_v5  ;;  %v1605_v10 = vld [vmem:[#allocation7 + $0x18] sm:$0xff]  ;;  %1277 = vmatprep.subr.bf16.mxu0 %v1276_v3  ;;  %v1611_v13 = vld [vmem:[#allocation4 + $0x28] sm:$0xff]  ;;  %v1613_v14 = vld [vmem:[#allocation7 + $0x20] sm:$0xff]  ;;  %p1520_p2 = scmp.ne.s32.totalorder %s1091_s6, %s1519_s8  ;;  %p1525_p4 = scmp.lt.s32.totalorder %s1519_s8, %s1519_s8 }
  0x2a   :  { %v1312_v11 = vpack.c.bf16 %v1605_v10, %v1603_v9  ;;  %1309 = vmatprep.subr.bf16.mxu1 %v1308_v7  ;;  %1279 = vmatpush3.bf16.xpose.msra.mxu0 %v1276_v3  ;;  %v1615_v15 = vld [vmem:[#allocation7 + $0x28] sm:$0xff]  ;;  %v1284_v16 = vpack.c.bf16 %v1611_v13, %v1609_v12  ;;  %v68_v18 = vld [vmem:[#allocation4 + $0x30] sm:$0xff]  ;;  %v69_v19 = vld [vmem:[#allocation4 + $0x38] sm:$0xff] }
  0x2b   :  { %1311 = vmatpush3.bf16.xpose.msra.mxu1 %v1308_v7  ;;  %1281 = vmatprep.subr.bf16.mxu0 %v1280_v8  ;;  %v1316_v17 = vpack.c.bf16 %v1615_v15, %v1613_v14  ;;  %v262_v20 = vld [vmem:[#allocation7 + $0x30] sm:$0xff]  ;;  %v263_v21 = vld [vmem:[#allocation7 + $0x38] sm:$0xff]  ;;  %v1288_v22 = vpack.c.bf16 %v69_v19, %v68_v18  ;;  %v70_v24 = vld [vmem:[#allocation4 + $0x40] sm:$0xff]  ;;  %p1526_p5 = por %p1525_p4, %p1524_p3 }
  0x2c   :  { %1313 = vmatprep.subr.bf16.mxu1 %v1312_v11  ;;  %v1320_v23 = vpack.c.bf16 %v263_v21, %v262_v20  ;;  %v71_v25 = vld [vmem:[#allocation4 + $0x48] sm:$0xff]  ;;  %v264_v26 = vld [vmem:[#allocation7 + $0x40] sm:$0xff]  ;;  %v72_v30 = vld [vmem:[#allocation4 + $0x50] sm:$0xff] }
  0x2d   :  { %v265_v27 = vld [vmem:[#allocation7 + $0x48] sm:$0xff]  ;;  %v1292_v28 = vpack.c.bf16 %v71_v25, %v70_v24  ;;  %v73_v31 = vld [vmem:[#allocation4 + $0x58] sm:$0xff]  ;;  %v266_v32 = vld [vmem:[#allocation7 + $0x50] sm:$0xff]  ;;  %p1527_p6 = pnand %p1526_p5, %p1520_p2 }
  0x2e   :  { %v1324_v29 = vpack.c.bf16 %v265_v27, %v264_v26  ;;  %v267_v33 = vld [vmem:[#allocation7 + $0x58] sm:$0xff]  ;;  %v1296_v34 = vpack.c.bf16 %v73_v31, %v72_v30  ;;  %v74_v36 = vld [vmem:[#allocation4 + $0x60] sm:$0xff]  ;;  %v75_v37 = vld [vmem:[#allocation4 + $0x68] sm:$0xff] }
  0x2f   :  { %v1328_v35 = vpack.c.bf16 %v267_v33, %v266_v32  ;;  %v268_v38 = vld [vmem:[#allocation7 + $0x60] sm:$0xff]  ;;  %v269_v39 = vld [vmem:[#allocation7 + $0x68] sm:$0xff]  ;;  %v1300_v40 = vpack.c.bf16 %v75_v37, %v74_v36  ;;  %v76_v42 = vld [vmem:[#allocation4 + $0x70] sm:$0xff] }
  0x30   :  { %v1332_v41 = vpack.c.bf16 %v269_v39, %v268_v38  ;;  %v77_v43 = vld [vmem:[#allocation4 + $0x78] sm:$0xff]  ;;  %v270_v44 = vld [vmem:[#allocation7 + $0x70] sm:$0xff] }
  0x31   :  { %v271_v45 = vld [vmem:[#allocation7 + $0x78] sm:$0xff]  ;;  %v1304_v46 = vpack.c.bf16 %v77_v43, %v76_v42 }
  0x32   :  { %1283 = vmatpush3.bf16.xpose.msra.mxu0 %v1280_v8  ;;  %v1336_v47 = vpack.c.bf16 %v271_v45, %v270_v44 }
  0x33   :  { %1315 = vmatpush3.bf16.xpose.msra.mxu1 %v1312_v11  ;;  %1285 = vmatprep.subr.bf16.mxu0 %v1284_v16 }
  0x34   :  { %1317 = vmatprep.subr.bf16.mxu1 %v1316_v17 }
  0x3a   :  { %1287 = vmatpush3.bf16.xpose.msra.mxu0 %v1284_v16 }
  0x3b   :  { %1319 = vmatpush3.bf16.xpose.msra.mxu1 %v1316_v17  ;;  %1289 = vmatprep.subr.bf16.mxu0 %v1288_v22 }
  0x3c   :  { %1321 = vmatprep.subr.bf16.mxu1 %v1320_v23 }
  0x42   :  { %1291 = vmatpush3.bf16.xpose.msra.mxu0 %v1288_v22 }
  0x43   :  { %1323 = vmatpush3.bf16.xpose.msra.mxu1 %v1320_v23  ;;  %1293 = vmatprep.subr.bf16.mxu0 %v1292_v28 }
  0x44   :  { %1325 = vmatprep.subr.bf16.mxu1 %v1324_v29 }
  0x4a   :  { %1295 = vmatpush3.bf16.xpose.msra.mxu0 %v1292_v28 }
  0x4b   :  { %1327 = vmatpush3.bf16.xpose.msra.mxu1 %v1324_v29  ;;  %1297 = vmatprep.subr.bf16.mxu0 %v1296_v34 }
  0x4c   :  { %1329 = vmatprep.subr.bf16.mxu1 %v1328_v35 }
  0x52   :  { %1299 = vmatpush3.bf16.xpose.msra.mxu0 %v1296_v34 }
  0x53   :  { %1331 = vmatpush3.bf16.xpose.msra.mxu1 %v1328_v35  ;;  %1301 = vmatprep.subr.bf16.mxu0 %v1300_v40 }
  0x54   :  { %1333 = vmatprep.subr.bf16.mxu1 %v1332_v41 }
  0x5a   :  { %1303 = vmatpush3.bf16.xpose.msra.mxu0 %v1300_v40 }
  0x5b   :  { %1335 = vmatpush3.bf16.xpose.msra.mxu1 %v1332_v41  ;;  %1305 = vmatprep.subr.bf16.mxu0 %v1304_v46 }
  0x5c   :  { %1337 = vmatprep.subr.bf16.mxu1 %v1336_v47 }
  0x62   :  { %1307 = vmatpush3.bf16.xpose.msra.mxu0 %v1304_v46 }
  0x63   :  { %1339 = vmatpush3.bf16.xpose.msra.mxu1 %v1336_v47 }
  0x69   :  { %1197 = vmatmul.mubr.f32.vlgmr.msra.gmra.mrb[0].mxu0 %v1591_v1 }
  0x6a   :  { %1253 = vmatmul.mubr.f32.vlgmr.msra.gmra.mrb[0].mxu1 %v1594_v4  ;;  %1199 = vmatprep.mubr.f32.mxu0 %v1596_v5 }
  0x6b   :  { %1255 = vmatprep.mubr.f32.mxu1 %v1603_v9 }
  0x6d   :  { %1200 = vmatmul.mubr.f32.gmra.mrb[2].mxu0 %v1598_v6 }
  0x6e   :  { %1256 = vmatmul.mubr.f32.gmra.mrb[2].mxu1 %v1605_v10  ;;  %1202 = vmatprep.mubr.f32.mxu0 %v1609_v12 }
  0x6f   :  { %1258 = vmatprep.mubr.f32.mxu1 %v1613_v14 }
  0x71   :  { %1203 = vmatmul.mubr.f32.gmra.mrb[4].mxu0 %v1611_v13 }
  0x72   :  { %1259 = vmatmul.mubr.f32.gmra.mrb[4].mxu1 %v1615_v15  ;;  %1205 = vmatprep.mubr.f32.mxu0 %v68_v18 }
  0x73   :  { %1261 = vmatprep.mubr.f32.mxu1 %v262_v20 }
  0x75   :  { %1206 = vmatmul.mubr.f32.gmra.mrb[6].mxu0 %v69_v19 }
  0x76   :  { %1262 = vmatmul.mubr.f32.gmra.mrb[6].mxu1 %v263_v21  ;;  %1208 = vmatprep.mubr.f32.mxu0 %v70_v24 }
  0x77   :  { %1264 = vmatprep.mubr.f32.mxu1 %v264_v26 }
  0x79   :  { %1209 = vmatmul.mubr.f32.gmra.mrb[8].mxu0 %v71_v25 }
  0x7a   :  { %1265 = vmatmul.mubr.f32.gmra.mrb[8].mxu1 %v265_v27  ;;  %1211 = vmatprep.mubr.f32.mxu0 %v72_v30 }
  0x7b   :  { %1267 = vmatprep.mubr.f32.mxu1 %v266_v32 }
  0x7d   :  { %1212 = vmatmul.mubr.f32.gmra.mrb[10].mxu0 %v73_v31 }
  0x7e   :  { %1268 = vmatmul.mubr.f32.gmra.mrb[10].mxu1 %v267_v33  ;;  %1214 = vmatprep.mubr.f32.mxu0 %v74_v36 }
  0x7f   :  { %1270 = vmatprep.mubr.f32.mxu1 %v268_v38 }
  0x81   :  { %1215 = vmatmul.mubr.f32.gmra.mrb[12].mxu0 %v75_v37 }
  0x82   :  { %1271 = vmatmul.mubr.f32.gmra.mrb[12].mxu1 %v269_v39  ;;  %1217 = vmatprep.mubr.f32.mxu0 %v76_v42 }
  0x83   :  { %1273 = vmatprep.mubr.f32.mxu1 %v270_v44 }
  0x85   :  { %1218 = vmatmul.mubr.f32.gmra.mrb[14].mxu0 %v77_v43 }
  0x86   :  { %1274 = vmatmul.mubr.f32.gmra.mrb[14].mxu1 %v271_v45 }
 0x13c   :  { %v1198_v48 = vpop.f32.mrb[0].mxu0 }
 0x13d   :  { %v1254_v49 = vpop.f32.mrb[0].mxu1  ;;  %v144_v50 = vpop.f32.mrb[1].mxu0  ;;  %v466_v51 = vmul.f32 %v1198_v48, %v1198_v48 }
 0x13e   :  { %v338_v52 = vpop.f32.mrb[1].mxu1  ;;  %v514_v53 = vmul.f32 %v1254_v49, %v1254_v49  ;;  %v1631_v54 = vmul.f32 %v1254_v49, %v1198_v48  ;;  %v465_v58 = vmul.f32 %v144_v50, %v144_v50 }
 0x13f   :  { %483 = vadd.xlane.f32.xlu0 %v466_v51  ;;  %v1633_v55 = vmul.f32 %v338_v52, %v144_v50  ;;  %v513_v60 = vmul.f32 %v338_v52, %v338_v52 }
 0x140   :  { %531 = vadd.xlane.f32.xlu1 %v514_v53  ;;  %v1201_v56 = vpop.f32.mrb[2].mxu0 }
 0x141   :  { %v1257_v57 = vpop.f32.mrb[2].mxu1  ;;  %v154_v59 = vpop.f32.mrb[3].mxu0  ;;  %v468_v63 = vmul.f32 %v1201_v56, %v1201_v56 }
 0x142   :  { %v348_v61 = vpop.f32.mrb[3].mxu1  ;;  %v1635_v62 = vmul.f32 %v1257_v57, %v1201_v56  ;;  %v516_v1 = vmul.f32 %v1257_v57, %v1257_v57  ;;  %v467_v9 = vmul.f32 %v154_v59, %v154_v59 }
 0x143   :  { %481 = vadd.xlane.f32.xlu0 %v465_v58  ;;  %v1637_v0 = vmul.f32 %v348_v61, %v154_v59  ;;  %v515_v12 = vmul.f32 %v348_v61, %v348_v61 }
 0x144   :  { %529 = vadd.xlane.f32.xlu1 %v513_v60  ;;  %v1204_v2 = vpop.f32.mrb[4].mxu0 }
 0x145   :  { %v1260_v3 = vpop.f32.mrb[4].mxu1  ;;  %v164_v4 = vpop.f32.mrb[5].mxu0  ;;  %v470_v15 = vmul.f32 %v1204_v2, %v1204_v2 }
 0x146   :  { %v358_v5 = vpop.f32.mrb[5].mxu1  ;;  %v1639_v6 = vmul.f32 %v1260_v3, %v1204_v2  ;;  %v518_v17 = vmul.f32 %v1260_v3, %v1260_v3  ;;  %v469_v25 = vmul.f32 %v164_v4, %v164_v4 }
 0x147   :  { %487 = vadd.xlane.f32.xlu0 %v468_v63  ;;  %v1641_v7 = vmul.f32 %v358_v5, %v164_v4  ;;  %v517_v28 = vmul.f32 %v358_v5, %v358_v5 }
 0x148   :  { %535 = vadd.xlane.f32.xlu1 %v516_v1  ;;  %v1207_v8 = vpop.f32.mrb[6].mxu0 }
 0x149   :  { %v1263_v10 = vpop.f32.mrb[6].mxu1  ;;  %v174_v11 = vpop.f32.mrb[7].mxu0  ;;  %v472_v31 = vmul.f32 %v1207_v8, %v1207_v8 }
 0x14a   :  { %v368_v13 = vpop.f32.mrb[7].mxu1  ;;  %v1643_v14 = vmul.f32 %v1263_v10, %v1207_v8  ;;  %v520_v33 = vmul.f32 %v1263_v10, %v1263_v10  ;;  %v471_v41 = vmul.f32 %v174_v11, %v174_v11 }
 0x14b   :  { %485 = vadd.xlane.f32.xlu0 %v467_v9  ;;  %v1645_v16 = vmul.f32 %v368_v13, %v174_v11  ;;  %v519_v44 = vmul.f32 %v368_v13, %v368_v13 }
 0x14c   :  { %533 = vadd.xlane.f32.xlu1 %v515_v12  ;;  %v1210_v18 = vpop.f32.mrb[8].mxu0 }
 0x14d   :  { %v1266_v19 = vpop.f32.mrb[8].mxu1  ;;  %v184_v20 = vpop.f32.mrb[9].mxu0  ;;  %v474_v47 = vmul.f32 %v1210_v18, %v1210_v18 }
 0x14e   :  { %v378_v21 = vpop.f32.mrb[9].mxu1  ;;  %v1647_v22 = vmul.f32 %v1266_v19, %v1210_v18  ;;  %v522_v49 = vmul.f32 %v1266_v19, %v1266_v19  ;;  %v473_v50 = vmul.f32 %v184_v20, %v184_v20 }
 0x14f   :  { %491 = vadd.xlane.f32.xlu0 %v470_v15  ;;  %v1649_v23 = vmul.f32 %v378_v21, %v184_v20  ;;  %v521_v51 = vmul.f32 %v378_v21, %v378_v21 }
 0x150   :  { %539 = vadd.xlane.f32.xlu1 %v518_v17  ;;  %v1213_v24 = vpop.f32.mrb[10].mxu0 }
 0x151   :  { %v1269_v26 = vpop.f32.mrb[10].mxu1  ;;  %v194_v27 = vpop.f32.mrb[11].mxu0  ;;  %v476_v52 = vmul.f32 %v1213_v24, %v1213_v24 }
 0x152   :  { %v388_v29 = vpop.f32.mrb[11].mxu1  ;;  %v1651_v30 = vmul.f32 %v1269_v26, %v1213_v24  ;;  %v524_v53 = vmul.f32 %v1269_v26, %v1269_v26  ;;  %v475_v56 = vmul.f32 %v194_v27, %v194_v27 }
 0x153   :  { %489 = vadd.xlane.f32.xlu0 %v469_v25  ;;  %v571_v32 = vmul.f32 %v388_v29, %v194_v27  ;;  %v523_v57 = vmul.f32 %v388_v29, %v388_v29 }
 0x154   :  { %537 = vadd.xlane.f32.xlu1 %v517_v28  ;;  %v1216_v34 = vpop.f32.mrb[12].mxu0 }
 0x155   :  { %v1272_v35 = vpop.f32.mrb[12].mxu1  ;;  %v204_v36 = vpop.f32.mrb[13].mxu0  ;;  %v478_v58 = vmul.f32 %v1216_v34, %v1216_v34 }
 0x156   :  { %v398_v37 = vpop.f32.mrb[13].mxu1  ;;  %v574_v38 = vmul.f32 %v1272_v35, %v1216_v34  ;;  %v526_v59 = vmul.f32 %v1272_v35, %v1272_v35  ;;  %v477_v60 = vmul.f32 %v204_v36, %v204_v36 }
 0x157   :  { %495 = vadd.xlane.f32.xlu0 %v472_v31  ;;  %v573_v39 = vmul.f32 %v398_v37, %v204_v36  ;;  %v525_v61 = vmul.f32 %v398_v37, %v398_v37 }
 0x158   :  { %543 = vadd.xlane.f32.xlu1 %v520_v33  ;;  %v1219_v40 = vpop.f32.mrb[14].mxu0 }
 0x159   :  { %v1275_v42 = vpop.f32.mrb[14].mxu1  ;;  %v214_v43 = vpop.f32.mrb[15].mxu0  ;;  %v480_v63 = vmul.f32 %v1219_v40, %v1219_v40 }
 0x15a   :  { %v408_v45 = vpop.f32.mrb[15].mxu1  ;;  %v576_v46 = vmul.f32 %v1275_v42, %v1219_v40  ;;  %v528_v1 = vmul.f32 %v1275_v42, %v1275_v42  ;;  %v479_v2 = vmul.f32 %v214_v43, %v214_v43 }
 0x15b   :  { %493 = vadd.xlane.f32.xlu0 %v471_v41  ;;  %v575_v48 = vmul.f32 %v408_v45, %v214_v43  ;;  %v527_v3 = vmul.f32 %v408_v45, %v408_v45 }
 0x15c   :  { %541 = vadd.xlane.f32.xlu1 %v519_v44 }
 0x15f   :  { %499 = vadd.xlane.f32.xlu0 %v474_v47 }
 0x160   :  { %547 = vadd.xlane.f32.xlu1 %v522_v49 }
 0x163   :  { %497 = vadd.xlane.f32.xlu0 %v473_v50 }
 0x164   :  { %545 = vadd.xlane.f32.xlu1 %v521_v51 }
 0x167   :  { %503 = vadd.xlane.f32.xlu0 %v476_v52 }
 0x168   :  { %551 = vadd.xlane.f32.xlu1 %v524_v53 }
 0x16b   :  { %501 = vadd.xlane.f32.xlu0 %v475_v56 }
 0x16c   :  { %549 = vadd.xlane.f32.xlu1 %v523_v57 }
 0x16f   :  { %507 = vadd.xlane.f32.xlu0 %v478_v58 }
 0x170   :  { %555 = vadd.xlane.f32.xlu1 %v526_v59 }
 0x173   :  { %505 = vadd.xlane.f32.xlu0 %v477_v60 }
 0x174   :  { %553 = vadd.xlane.f32.xlu1 %v525_v61 }
 0x177   :  { %511 = vadd.xlane.f32.xlu0 %v480_v63 }
 0x178   :  { %559 = vadd.xlane.f32.xlu1 %v528_v1 }
 0x17b   :  { %509 = vadd.xlane.f32.xlu0 %v479_v2 }
 0x17c   :  { %557 = vadd.xlane.f32.xlu1 %v527_v3 }
 0x17f   :  { %577 = vadd.xlane.f32.xlu0 %v1633_v55 }
 0x180   :  { %579 = vadd.xlane.f32.xlu1 %v1631_v54 }
 0x183   :  { %581 = vadd.xlane.f32.xlu0 %v1637_v0 }
 0x184   :  { %583 = vadd.xlane.f32.xlu1 %v1635_v62 }
 0x187   :  { %585 = vadd.xlane.f32.xlu0 %v1641_v7 }
 0x188   :  { %587 = vadd.xlane.f32.xlu1 %v1639_v6 }
 0x18b   :  { %589 = vadd.xlane.f32.xlu0 %v1645_v16 }
 0x18c   :  { %591 = vadd.xlane.f32.xlu1 %v1643_v14 }
 0x18f   :  { %593 = vadd.xlane.f32.xlu0 %v1649_v23 }
 0x190   :  { %595 = vadd.xlane.f32.xlu1 %v1647_v22 }
 0x193   :  { %597 = vadd.xlane.f32.xlu0 %v571_v32 }
 0x194   :  { %599 = vadd.xlane.f32.xlu1 %v1651_v30 }
 0x197   :  { %601 = vadd.xlane.f32.xlu0 %v573_v39 }
 0x198   :  { %603 = vadd.xlane.f32.xlu1 %v574_v38 }
 0x19b   :  { %605 = vadd.xlane.f32.xlu0 %v575_v48 }
 0x19c   :  { %607 = vadd.xlane.f32.xlu1 %v576_v46 }
 0x1cc   :  { %v1664_v54 = vpop.xlane.xlu0 %483 }
 0x1cd   :  { %v1666_v55 = vpop.xlane.xlu1 %531  ;;  %1347 = vrsqrt.f32 %v1664_v54  ;;  %vm618_vm1 = vcmp.eq.f32.partialorder %v1664_v54, inf  ;;  %vm620_vm2 = vcmp.eq.f32.partialorder %v1664_v54, 0.0  ;;  %v621_v7 = vand.u32 2147483648, %v1664_v54 }
 0x1ce   :  { %1349 = vrsqrt.f32 %v1666_v55  ;;  %vm762_vm0 = vcmp.eq.f32.partialorder %v1666_v55, inf  ;;  %vm764_vm3 = vcmp.eq.f32.partialorder %v1666_v55, 0.0  ;;  %v765_v9 = vand.u32 2147483648, %v1666_v55 }
 0x1d0   :  { %v1670_v62 = vpop.xlane.xlu0 %481 }
 0x1d1   :  { %v1672_v0 = vpop.xlane.xlu1 %529  ;;  %1351 = vrsqrt.f32 %v1670_v62  ;;  %vm611_vm4 = vcmp.eq.f32.partialorder %v1670_v62, inf  ;;  %vm613_vm5 = vcmp.eq.f32.partialorder %v1670_v62, 0.0  ;;  %v614_v13 = vand.u32 2147483648, %v1670_v62 }
 0x1d2   :  { %1353 = vrsqrt.f32 %v1672_v0  ;;  %vm755_vm6 = vcmp.eq.f32.partialorder %v1672_v0, inf  ;;  %vm757_vm7 = vcmp.eq.f32.partialorder %v1672_v0, 0.0  ;;  %v758_v19 = vand.u32 2147483648, %v1672_v0 }
 0x1d4   :  { %v1676_v4 = vpop.xlane.xlu0 %487 }
 0x1d5   :  { %v1678_v5 = vpop.xlane.xlu1 %535  ;;  %1355 = vrsqrt.f32 %v1676_v4  ;;  %vm632_vm8 = vcmp.eq.f32.partialorder %v1676_v4, inf  ;;  %vm634_vm9 = vcmp.eq.f32.partialorder %v1676_v4, 0.0  ;;  %v635_v23 = vand.u32 2147483648, %v1676_v4 }
 0x1d6   :  { %1357 = vrsqrt.f32 %v1678_v5  ;;  %vm776_vm10 = vcmp.eq.f32.partialorder %v1678_v5, inf  ;;  %vm778_vm11 = vcmp.eq.f32.partialorder %v1678_v5, 0.0  ;;  %v779_v30 = vand.u32 2147483648, %v1678_v5 }
 0x1d7   :  { %v1348_v6 = vpop.eup %1347 }
 0x1d8   :  { %v1350_v8 = vpop.eup %1349  ;;  %v617_v10 = vmul.f32 %v1348_v6, %v1664_v54  ;;  %v1690_v11 = vpop.xlane.xlu0 %485 }
 0x1d9   :  { %v761_v12 = vmul.f32 %v1350_v8, %v1666_v55  ;;  %v1695_v14 = vpop.xlane.xlu1 %533  ;;  %1359 = vrsqrt.f32 %v1690_v11  ;;  %vm625_vm12 = vcmp.eq.f32.partialorder %v1690_v11, inf  ;;  %vm627_vm13 = vcmp.eq.f32.partialorder %v1690_v11, 0.0 }
 0x1da   :  { %v619_v15 = vsel %vm618_vm1, %v1664_v54, %v617_v10  ;;  %1361 = vrsqrt.f32 %v1695_v14  ;;  %vm769_vm14 = vcmp.eq.f32.partialorder %v1695_v14, inf  ;;  %vm771_vm15 = vcmp.eq.f32.partialorder %v1695_v14, 0.0 }
 0x1db   :  { %v1352_v16 = vpop.eup %1351  ;;  %v763_v17 = vsel %vm762_vm0, %v1666_v55, %v761_v12  ;;  %v622_v18 = vsel %vm620_vm2, %v621_v7, %v619_v15  ;;  %v772_v43 = vand.u32 2147483648, %v1695_v14  ;;  %v628_v47 = vand.u32 2147483648, %v1690_v11 }
 0x1dc   :  { %v1354_v20 = vpop.eup %1353  ;;  %v766_v21 = vsel %vm764_vm3, %v765_v9, %v763_v17  ;;  %v610_v22 = vmul.f32 %v1352_v16, %v1670_v62  ;;  %v1714_v24 = vpop.xlane.xlu0 %491  ;;  %v722_v25 = vmax.f32 %v622_v18, 1e-12 }
 0x1dd   :  { %v754_v26 = vmul.f32 %v1354_v20, %v1672_v0  ;;  %v1718_v27 = vpop.xlane.xlu1 %539  ;;  %1363 = vrsqrt.f32 %v1714_v24  ;;  %v866_v28 = vmax.f32 %v766_v21, 1e-12  ;;  %vm646_vm1 = vcmp.eq.f32.partialorder %v1714_v24, inf }
 0x1de   :  { %v612_v29 = vsel %vm611_vm4, %v1670_v62, %v610_v22  ;;  %1365 = vrsqrt.f32 %v1718_v27  ;;  %vm790_vm0 = vcmp.eq.f32.partialorder %v1718_v27, inf  ;;  %vm792_vm2 = vcmp.eq.f32.partialorder %v1718_v27, 0.0 }
 0x1df   :  { %v1356_v31 = vpop.eup %1355  ;;  %v756_v32 = vsel %vm755_vm6, %v1672_v0, %v754_v26  ;;  %v615_v33 = vsel %vm613_vm5, %v614_v13, %v612_v29  ;;  %1367 = vrcp.f32 %v722_v25  ;;  %v793_v63 = vand.u32 2147483648, %v1718_v27 }
 0x1e0   :  { %v1358_v34 = vpop.eup %1357  ;;  %v759_v35 = vsel %vm757_vm7, %v758_v19, %v756_v32  ;;  %v721_v36 = vmax.f32 %v615_v33, 1e-12  ;;  %v631_v37 = vmul.f32 %v1356_v31, %v1676_v4  ;;  %v1737_v38 = vpop.xlane.xlu0 %489  ;;  %1369 = vrcp.f32 %v866_v28 }
 0x1e1   :  { %v775_v39 = vmul.f32 %v1358_v34, %v1678_v5  ;;  %v1742_v40 = vpop.xlane.xlu1 %537  ;;  %v865_v41 = vmax.f32 %v759_v35, 1e-12  ;;  %vm648_vm3 = vcmp.eq.f32.partialorder %v1714_v24, 0.0  ;;  %v649_v7 = vand.u32 2147483648, %v1714_v24 }
 0x1e2   :  { %v633_v42 = vsel %vm632_vm8, %v1676_v4, %v631_v37  ;;  %1371 = vrcp.f32 %v721_v36  ;;  %vm783_vm4 = vcmp.eq.f32.partialorder %v1742_v40, inf  ;;  %vm785_vm5 = vcmp.eq.f32.partialorder %v1742_v40, 0.0 }
 0x1e3   :  { %v1360_v44 = vpop.eup %1359  ;;  %v777_v45 = vsel %vm776_vm10, %v1678_v5, %v775_v39  ;;  %v636_v46 = vsel %vm634_vm9, %v635_v23, %v633_v42  ;;  %1373 = vrsqrt.f32 %v1742_v40  ;;  %v786_v16 = vand.u32 2147483648, %v1742_v40 }
 0x1e4   :  { %v1362_v48 = vpop.eup %1361  ;;  %v780_v49 = vsel %vm778_vm11, %v779_v30, %v777_v45  ;;  %v724_v50 = vmax.f32 %v636_v46, 1e-12  ;;  %v624_v51 = vmul.f32 %v1360_v44, %v1690_v11  ;;  %v1758_v52 = vpop.xlane.xlu0 %495  ;;  %1375 = vrsqrt.f32 %v1737_v38 }
 0x1e5   :  { %v768_v53 = vmul.f32 %v1362_v48, %v1695_v14  ;;  %v1764_v56 = vpop.xlane.xlu1 %543  ;;  %1377 = vrcp.f32 %v865_v41  ;;  %v868_v57 = vmax.f32 %v780_v49, 1e-12  ;;  %vm639_vm6 = vcmp.eq.f32.partialorder %v1737_v38, inf }
 0x1e6   :  { %v626_v58 = vsel %vm625_vm12, %v1690_v11, %v624_v51  ;;  %1379 = vrcp.f32 %v724_v50  ;;  %vm641_vm7 = vcmp.eq.f32.partialorder %v1737_v38, 0.0  ;;  %v642_v19 = vand.u32 2147483648, %v1737_v38 }
 0x1e7   :  { %v1364_v59 = vpop.eup %1363  ;;  %v770_v60 = vsel %vm769_vm14, %v1695_v14, %v768_v53  ;;  %v629_v61 = vsel %vm627_vm13, %v628_v47, %v626_v58  ;;  %1381 = vrsqrt.f32 %v1764_v56  ;;  %vm804_vm8 = vcmp.eq.f32.partialorder %v1764_v56, inf }
 0x1e8   :  { %v773_v1 = vsel %vm771_vm15, %v772_v43, %v770_v60  ;;  %v723_v2 = vmax.f32 %v629_v61, 1e-12  ;;  %v645_v3 = vmul.f32 %v1364_v59, %v1714_v24  ;;  %v1780_v6 = vpop.xlane.xlu0 %493  ;;  %1383 = vrsqrt.f32 %v1758_v52  ;;  %v1366_v9 = vpop.eup %1365 }
 0x1e9   :  { %v1786_v8 = vpop.xlane.xlu1 %541  ;;  %1385 = vrcp.f32 %v868_v57  ;;  %v867_v10 = vmax.f32 %v773_v1, 1e-12  ;;  %v1792_v13 = vpop.eup %1367  ;;  %v789_v15 = vmul.f32 %v1366_v9, %v1718_v27  ;;  %vm806_vm9 = vcmp.eq.f32.partialorder %v1764_v56, 0.0 }
 0x1ea   :  { %v647_v12 = vsel %vm646_vm1, %v1714_v24, %v645_v3  ;;  %1387 = vrcp.f32 %v723_v2  ;;  %v1797_v17 = vpop.eup %1369  ;;  %v807_v28 = vand.u32 2147483648, %v1764_v56  ;;  %vm660_vm10 = vcmp.eq.f32.partialorder %v1758_v52, inf }
 0x1eb   :  { %v650_v18 = vsel %vm648_vm3, %v649_v7, %v647_v12  ;;  %1389 = vrsqrt.f32 %v1786_v8  ;;  %v791_v22 = vsel %vm790_vm0, %v1718_v27, %v789_v15  ;;  %vm662_vm11 = vcmp.eq.f32.partialorder %v1758_v52, 0.0 }
 0x1ec   :  { %v1804_v20 = vpop.xlane.xlu0 %499  ;;  %v1806_v21 = vpop.eup %1371  ;;  %1391 = vrsqrt.f32 %v1780_v6  ;;  %v794_v26 = vsel %vm792_vm2, %v793_v63, %v791_v22  ;;  %v726_v30 = vmax.f32 %v650_v18, 1e-12  ;;  %v663_v34 = vand.u32 2147483648, %v1758_v52 }
 0x1ed   :  { %v1814_v23 = vpop.xlane.xlu1 %547  ;;  %v1374_v25 = vpop.eup %1373  ;;  %1393 = vrcp.f32 %v867_v10  ;;  %vm797_vm12 = vcmp.eq.f32.partialorder %v1786_v8, inf  ;;  %v870_v37 = vmax.f32 %v794_v26, 1e-12  ;;  %vm799_vm13 = vcmp.eq.f32.partialorder %v1786_v8, 0.0 }
 0x1ee   :  { %v1376_v29 = vpop.eup %1375  ;;  %v782_v31 = vmul.f32 %v1374_v25, %v1742_v40  ;;  %1395 = vrsqrt.f32 %v1814_v23  ;;  %v800_v41 = vand.u32 2147483648, %v1786_v8  ;;  %vm653_vm14 = vcmp.eq.f32.partialorder %v1780_v6, inf }
 0x1ef   :  { %v1823_v32 = vpop.eup %1377  ;;  %v638_v33 = vmul.f32 %v1376_v29, %v1737_v38  ;;  %1397 = vrsqrt.f32 %v1804_v20  ;;  %vm655_vm15 = vcmp.eq.f32.partialorder %v1780_v6, 0.0  ;;  %v656_v51 = vand.u32 2147483648, %v1780_v6 }
 0x1f0   :  { %v1829_v35 = vpop.xlane.xlu0 %497  ;;  %v1831_v36 = vpop.eup %1379  ;;  %v784_v39 = vsel %vm783_vm4, %v1742_v40, %v782_v31  ;;  %vm818_vm0 = vcmp.eq.f32.partialorder %v1814_v23, inf  ;;  %vm820_vm1 = vcmp.eq.f32.partialorder %v1814_v23, 0.0  ;;  %v821_v60 = vand.u32 2147483648, %v1814_v23 }
 0x1f1   :  { %v1838_v42 = vpop.xlane.xlu1 %545  ;;  %v1382_v43 = vpop.eup %1381  ;;  %v787_v44 = vsel %vm785_vm5, %v786_v16, %v784_v39  ;;  %v640_v45 = vsel %vm639_vm6, %v1737_v38, %v638_v33  ;;  %vm674_vm2 = vcmp.eq.f32.partialorder %v1804_v20, inf  ;;  %vm676_vm3 = vcmp.eq.f32.partialorder %v1804_v20, 0.0 }
 0x1f2   :  { %1399 = vrsqrt.f32 %v1838_v42  ;;  %v1384_v46 = vpop.eup %1383  ;;  %v643_v47 = vsel %vm641_vm7, %v642_v19, %v640_v45  ;;  %v803_v48 = vmul.f32 %v1382_v43, %v1764_v56  ;;  %v869_v58 = vmax.f32 %v787_v44, 1e-12 }
 0x1f3   :  { %1401 = vrcp.f32 %v726_v30  ;;  %v1851_v49 = vpop.eup %1385  ;;  %v659_v50 = vmul.f32 %v1384_v46, %v1758_v52  ;;  %v725_v1 = vmax.f32 %v643_v47, 1e-12  ;;  %v677_v18 = vand.u32 2147483648, %v1804_v20 }
 0x1f4   :  { %v1857_v53 = vpop.xlane.xlu0 %503  ;;  %v1859_v57 = vpop.eup %1387  ;;  %1403 = vrcp.f32 %v870_v37  ;;  %v805_v59 = vsel %vm804_vm8, %v1764_v56, %v803_v48  ;;  %vm811_vm4 = vcmp.eq.f32.partialorder %v1838_v42, inf  ;;  %vm813_vm5 = vcmp.eq.f32.partialorder %v1838_v42, 0.0 }
 0x1f5   :  { %2285 = vst [vmem:[#allocation13_spill] sm:$0xff] %v1857_v53  ;;  %v1865_v61 = vpop.xlane.xlu1 %551  ;;  %v1390_v63 = vpop.eup %1389  ;;  %v808_v2 = vsel %vm806_vm9, %v807_v28, %v805_v59  ;;  %v661_v3 = vsel %vm660_vm10, %v1758_v52, %v659_v50  ;;  %1405 = vrsqrt.f32 %v1829_v35  ;;  %vm667_vm6 = vcmp.eq.f32.partialorder %v1829_v35, inf }
 0x1f6   :  { %2286 = vst [vmem:[#allocation14_spill] sm:$0xff] %v1865_v61  ;;  %v1392_v7 = vpop.eup %1391  ;;  %v664_v9 = vsel %vm662_vm11, %v663_v34, %v661_v3  ;;  %v796_v10 = vmul.f32 %v1390_v63, %v1786_v8  ;;  %v872_v15 = vmax.f32 %v808_v2, 1e-12  ;;  %1407 = vrsqrt.f32 %v1865_v61 }
 0x1f7   :  { %v1878_v12 = vpop.eup %1393  ;;  %v652_v16 = vmul.f32 %v1392_v7, %v1780_v6  ;;  %1409 = vrcp.f32 %v869_v58  ;;  %v728_v25 = vmax.f32 %v664_v9, 1e-12  ;;  %v814_v63 = vand.u32 2147483648, %v1838_v42 }
 0x1f8   :  { %v1883_v19 = vpop.xlane.xlu0 %501  ;;  %v1396_v22 = vpop.eup %1395  ;;  %v798_v26 = vsel %vm797_vm12, %v1786_v8, %v796_v10  ;;  %1411 = vrcp.f32 %v725_v1  ;;  %vm669_vm7 = vcmp.eq.f32.partialorder %v1829_v35, 0.0  ;;  %v670_v7 = vand.u32 2147483648, %v1829_v35 }
 0x1f9   :  { %v1889_v28 = vpop.xlane.xlu1 %549  ;;  %v1398_v29 = vpop.eup %1397  ;;  %v801_v30 = vsel %vm799_vm13, %v800_v41, %v798_v26  ;;  %v654_v31 = vsel %vm653_vm14, %v1780_v6, %v652_v16  ;;  %v817_v33 = vmul.f32 %v1396_v22, %v1814_v23  ;;  %1413 = vrsqrt.f32 %v1857_v53 }
 0x1fa   :  { %2287 = vst [vmem:[#allocation15_spill] sm:$0xff] %v1889_v28  ;;  %v871_v34 = vmax.f32 %v801_v30, 1e-12  ;;  %v657_v37 = vsel %vm655_vm15, %v656_v51, %v654_v31  ;;  %v673_v39 = vmul.f32 %v1398_v29, %v1804_v20  ;;  %1415 = vrcp.f32 %v872_v15 }
 0x1fb   :  { %v727_v44 = vmax.f32 %v657_v37, 1e-12  ;;  %v819_v41 = vsel %vm818_vm0, %v1814_v23, %v817_v33  ;;  %1417 = vrcp.f32 %v728_v25  ;;  %vm832_vm8 = vcmp.eq.f32.partialorder %v1865_v61, inf }
 0x1fc   :  { %v1400_v43 = vpop.eup %1399  ;;  %v1905_v45 = vpop.xlane.xlu0 %507  ;;  %v822_v47 = vsel %vm820_vm1, %v821_v60, %v819_v41  ;;  %v675_v48 = vsel %vm674_vm2, %v1804_v20, %v673_v39  ;;  %1419 = vrcp.f32 %v871_v34  ;;  %vm834_vm9 = vcmp.eq.f32.partialorder %v1865_v61, 0.0 }
 0x1fd   :  { %2288 = vst [vmem:[#allocation16_spill] sm:$0xff] %v1905_v45  ;;  %v1907_v46 = vpop.eup %1401  ;;  %v810_v50 = vmul.f32 %v1400_v43, %v1838_v42  ;;  %v1915_v51 = vpop.xlane.xlu1 %555  ;;  %v874_v58 = vmax.f32 %v822_v47, 1e-12  ;;  %v678_v59 = vsel %vm676_vm3, %v677_v18, %v675_v48  ;;  %1421 = vrsqrt.f32 %v1889_v28 }
 0x1fe   :  { %2289 = vst [vmem:[#allocation17_spill] sm:$0xff] %v1915_v51  ;;  %v1920_v1 = vpop.eup %1403  ;;  %v730_v2 = vmax.f32 %v678_v59, 1e-12  ;;  %1423 = vrcp.f32 %v727_v44  ;;  %v835_v15 = vand.u32 2147483648, %v1865_v61  ;;  %vm688_vm10 = vcmp.eq.f32.partialorder %v1857_v53, inf }
 0x1ff   :  { %v812_v60 = vsel %vm811_vm4, %v1838_v42, %v810_v50  ;;  %v1406_v10 = vpop.eup %1405  ;;  %1425 = vrcp.f32 %v874_v58  ;;  %vm690_vm11 = vcmp.eq.f32.partialorder %v1857_v53, 0.0  ;;  %v691_v30 = vand.u32 2147483648, %v1857_v53 }
 0x200   :  { %v815_v3 = vsel %vm813_vm5, %v814_v63, %v812_v60  ;;  %v1931_v9 = vpop.xlane.xlu0 %505  ;;  %v1408_v18 = vpop.eup %1407  ;;  %v666_v22 = vmul.f32 %v1406_v10, %v1829_v35  ;;  %1427 = vrsqrt.f32 %v1883_v19  ;;  %vm825_vm12 = vcmp.eq.f32.partialorder %v1889_v28, inf }
 0x201   :  { %v1936_v16 = vpop.xlane.xlu1 %553  ;;  %v1942_v25 = vpop.eup %1409  ;;  %1429 = vrcp.f32 %v730_v2  ;;  %v873_v26 = vmax.f32 %v815_v3, 1e-12  ;;  %v831_v29 = vmul.f32 %v1408_v18, %v1865_v61  ;;  %vm827_vm13 = vcmp.eq.f32.partialorder %v1889_v28, 0.0 }
 0x202   :  { %v1946_v31 = vpop.eup %1411  ;;  %v668_v33 = vsel %vm667_vm6, %v1829_v35, %v666_v22  ;;  %1431 = vrsqrt.f32 %v1915_v51  ;;  %v828_v43 = vand.u32 2147483648, %v1889_v28  ;;  %vm681_vm14 = vcmp.eq.f32.partialorder %v1883_v19, inf }
 0x203   :  { %v1414_v34 = vpop.eup %1413  ;;  %v671_v37 = vsel %vm669_vm7, %v670_v7, %v668_v33  ;;  %v833_v39 = vsel %vm832_vm8, %v1865_v61, %v831_v29  ;;  %1433 = vrsqrt.f32 %v1905_v45  ;;  %vm683_vm15 = vcmp.eq.f32.partialorder %v1883_v19, 0.0 }
 0x204   :  { %v1963_v41 = vpop.eup %1415  ;;  %v729_v47 = vmax.f32 %v671_v37, 1e-12  ;;  %v836_v48 = vsel %vm834_vm9, %v835_v15, %v833_v39  ;;  %v687_v50 = vmul.f32 %v1414_v34, %v1857_v53  ;;  %1435 = vrsqrt.f32 %v1936_v16  ;;  %v1969_v58 = vpop.xlane.xlu0 %511 }
 0x205   :  { %v1961_v44 = vpop.xlane.xlu1 %559  ;;  %v1971_v59 = vpop.eup %1417  ;;  %1437 = vrcp.f32 %v873_v26  ;;  %v876_v63 = vmax.f32 %v836_v48, 1e-12  ;;  %v684_v3 = vand.u32 2147483648, %v1883_v19  ;;  %vm846_vm0 = vcmp.eq.f32.partialorder %v1915_v51, inf }
 0x206   :  { %v1975_v2 = vpop.eup %1419  ;;  %1439 = vrcp.f32 %v729_v47  ;;  %v689_v60 = vsel %vm688_vm10, %v1857_v53, %v687_v50  ;;  %vm848_vm1 = vcmp.eq.f32.partialorder %v1915_v51, 0.0  ;;  %v849_v15 = vand.u32 2147483648, %v1915_v51 }
 0x207   :  { %v1422_v7 = vpop.eup %1421  ;;  %1441 = vrcp.f32 %v876_v63  ;;  %v692_v10 = vsel %vm690_vm11, %v691_v30, %v689_v60  ;;  %vm702_vm2 = vcmp.eq.f32.partialorder %v1905_v45, inf  ;;  %vm704_vm3 = vcmp.eq.f32.partialorder %v1905_v45, 0.0 }
 0x208   :  { %v1988_v22 = vpop.eup %1423  ;;  %v732_v26 = vmax.f32 %v692_v10, 1e-12  ;;  %v824_v29 = vmul.f32 %v1422_v7, %v1889_v28  ;;  %1443 = vrsqrt.f32 %v1931_v9  ;;  %v705_v30 = vand.u32 2147483648, %v1905_v45  ;;  %v2004_v47 = vpop.xlane.xlu0 %509 }
 0x209   :  { %v1986_v18 = vpop.xlane.xlu1 %557  ;;  %v1993_v33 = vpop.eup %1425  ;;  %vm839_vm4 = vcmp.eq.f32.partialorder %v1936_v16, inf  ;;  %1445 = vrsqrt.f32 %v1961_v44  ;;  %vm841_vm5 = vcmp.eq.f32.partialorder %v1936_v16, 0.0  ;;  %v842_v39 = vand.u32 2147483648, %v1936_v16 }
 0x20a   :  { %2290 = vst [vmem:[#allocation18_spill] sm:$0xff] %v1986_v18  ;;  %v1428_v34 = vpop.eup %1427  ;;  %1447 = vrcp.f32 %v732_v26  ;;  %v826_v37 = vsel %vm825_vm12, %v1889_v28, %v824_v29  ;;  %vm695_vm6 = vcmp.eq.f32.partialorder %v1931_v9, inf  ;;  %vm697_vm7 = vcmp.eq.f32.partialorder %v1931_v9, 0.0 }
 0x20b   :  { %v2006_v48 = vpop.eup %1429  ;;  %v829_v50 = vsel %vm827_vm13, %v828_v43, %v826_v37  ;;  %v680_v63 = vmul.f32 %v1428_v34, %v1883_v19  ;;  %1449 = vrsqrt.f32 %v1969_v58  ;;  %vm860_vm8 = vcmp.eq.f32.partialorder %v1961_v44, inf }
 0x20c   :  { %v1432_v7 = vpop.eup %1431  ;;  %v875_v10 = vmax.f32 %v829_v50, 1e-12  ;;  %1451 = vrsqrt.f32 %v1986_v18  ;;  %vm862_vm9 = vcmp.eq.f32.partialorder %v1961_v44, 0.0  ;;  %vm1041_vm10 = vcmask 7168  }
 0x20d   :  { %v1434_v53 = vpop.eup %1433  ;;  %v682_v43 = vsel %vm681_vm14, %v1883_v19, %v680_v63  ;;  %v845_v34 = vmul.f32 %v1432_v7, %v1915_v51  ;;  %1453 = vrsqrt.f32 %v2004_v47  ;;  %v580_v50 = vpop.xlane.xlu1 %579  ;;  %vm716_vm11 = vcmp.eq.f32.partialorder %v1969_v58, inf }
 0x20e   :  { %v1436_v26 = vpop.eup %1435  ;;  %1455 = vrcp.f32 %v875_v10  ;;  %v685_v29 = vsel %vm683_vm15, %v684_v3, %v682_v43  ;;  %v701_v60 = vmul.f32 %v1434_v53, %v1905_v45  ;;  %v930_v3 = vmul.f32 %v1797_v17, %v1666_v55 }
 0x20f   :  { %v2030_v7 = vpop.eup %1437  ;;  %v731_v28 = vmax.f32 %v685_v29, 1e-12  ;;  %v847_v37 = vsel %vm846_vm0, %v1915_v51, %v845_v34  ;;  %v838_v61 = vmul.f32 %v1436_v26, %v1936_v16  ;;  %vm718_vm12 = vcmp.eq.f32.partialorder %v1969_v58, 0.0 }
 0x210   :  { %v2039_v53 = vpop.eup %1439  ;;  %v850_v10 = vsel %vm848_vm1, %v849_v15, %v847_v37  ;;  %v703_v29 = vsel %vm702_vm2, %v1905_v45, %v701_v60  ;;  %vm853_vm13 = vcmp.eq.f32.partialorder %v1986_v18, inf  ;;  %v898_v26 = vmul.f32 %v1792_v13, %v1664_v54  ;;  %v578_v45 = vpop.xlane.xlu0 %577 }
 0x211   :  { %v978_v43 = vmul.f32 2.0, %v580_v50  ;;  %v2050_v34 = vpop.eup %1441  ;;  %1457 = vrcp.f32 %v731_v28  ;;  %v878_v55 = vmax.f32 %v850_v10, 1e-12  ;;  %v706_v63 = vsel %vm704_vm3, %v705_v30, %v703_v29 }
 0x212   :  { %v840_v15 = vsel %vm839_vm4, %v1936_v16, %v838_v61  ;;  %vm855_vm14 = vcmp.eq.f32.partialorder %v1986_v18, 0.0  ;;  %vm709_vm15 = vcmp.eq.f32.partialorder %v2004_v47, inf  ;;  %v1444_v60 = vpop.eup %1443  ;;  %v734_v37 = vmax.f32 %v706_v63, 1e-12 }
 0x213   :  { %v843_v54 = vsel %vm841_vm5, %v842_v39, %v840_v15  ;;  %vm711_vm0 = vcmp.eq.f32.partialorder %v2004_v47, 0.0  ;;  %v946_v28 = vmul.f32 %v1797_v17, %v930_v3  ;;  %v914_v50 = vmul.f32 %v1792_v13, %v898_v26  ;;  %v1446_v30 = vpop.eup %1445 }
 0x214   :  { %1459 = vrcp.f32 %v878_v55  ;;  %v877_v10 = vmax.f32 %v843_v54, 1e-12  ;;  %v694_v61 = vmul.f32 %v1444_v60, %v1931_v9  ;;  %v994_v29 = vmul.f32 %v1797_v17, %v1792_v13  ;;  %v2067_v51 = vpop.eup %1447 }
 0x215   :  { %1461 = vrcp.f32 %v734_v37  ;;  %v859_v39 = vmul.f32 %v1446_v30, %v1961_v44  ;;  %v962_v63 = vadd.f32 %v946_v28, %v914_v50  ;;  %v897_v3 = vmul.f32 %v1806_v21, %v1670_v62  ;;  %v1450_v15 = vpop.eup %1449  ;;  %v584_v50 = vpop.xlane.xlu1 %583 }
 0x216   :  { %1463 = vrcp.f32 %v877_v10  ;;  %v696_v26 = vsel %vm695_vm6, %v1931_v9, %v694_v61  ;;  %v1010_v55 = vmul.f32 %v994_v29, %v978_v43  ;;  %v929_v13 = vmul.f32 %v1823_v32, %v1672_v0  ;;  %v1452_v17 = vpop.eup %1451 }
 0x217   :  { %v2291_v60 = vand.u32 2147483648, %v1931_v9  ;;  %v861_v62 = vsel %vm860_vm8, %v1961_v44, %v859_v39  ;;  %v715_v54 = vmul.f32 %v1450_v15, %v1969_v58  ;;  %v913_v28 = vmul.f32 %v1806_v21, %v897_v3  ;;  %v1454_v30 = vpop.eup %1453 }
 0x218   :  { %v2292_v10 = vand.u32 2147483648, %v1961_v44  ;;  %v852_v61 = vmul.f32 %v1452_v17, %v1986_v18  ;;  %v1026_v29 = vsub.f32 %v962_v63, %v1010_v55  ;;  %v708_v3 = vmul.f32 %v1454_v30, %v2004_v47  ;;  %v582_v17 = vpop.xlane.xlu0 %581 }
 0x219   :  { %v699_v37 = vsel %vm697_vm7, %v2291_v60, %v696_v26  ;;  %v2091_v26 = vpop.eup %1455  ;;  %v717_v39 = vsel %vm716_vm11, %v1969_v58, %v715_v54  ;;  %v945_v15 = vmul.f32 %v1823_v32, %v929_v13  ;;  %v2294_v54 = vand.u32 2147483648, %v1986_v18 }
 0x21a   :  { %v733_v43 = vmax.f32 %v699_v37, 1e-12  ;;  %v864_v0 = vsel %vm862_vm9, %v2292_v10, %v861_v62  ;;  %v2293_v37 = vand.u32 2147483648, %v1969_v58  ;;  %v854_v63 = vsel %vm853_vm13, %v1986_v18, %v852_v61 }
 0x21b   :  { %v880_v60 = vmax.f32 %v864_v0, 1e-12  ;;  %v1043_v55 = vsel %vm1041_vm10, %v1026_v29, 0.0  ;;  %v857_v13 = vsel %vm855_vm14, %v2294_v54, %v854_v63  ;;  %v710_v30 = vsel %vm709_vm15, %v2004_v47, %v708_v3  ;;  %v588_v54 = vpop.xlane.xlu1 %587 }
 0x21c   :  { %1465 = vrcp.f32 %v733_v43  ;;  %v720_v62 = vsel %vm718_vm12, %v2293_v37, %v717_v39  ;;  %v2113_v43 = vpop.eup %1457  ;;  %v879_v0 = vmax.f32 %v857_v13, 1e-12  ;;  %v2295_v39 = vand.u32 2147483648, %v2004_v47 }
 0x21d   :  { %1467 = vrcp.f32 %v880_v60  ;;  %v736_v10 = vmax.f32 %v720_v62, 1e-12  ;;  %v961_v29 = vadd.f32 %v945_v15, %v913_v28  ;;  %v993_v60 = vmul.f32 %v1823_v32, %v1806_v21 }
 0x21e   :  { %v713_v61 = vsel %vm711_vm0, %v2295_v39, %v710_v30  ;;  %v977_v62 = vmul.f32 2.0, %v578_v45  ;;  %v932_v63 = vmul.f32 %v1851_v49, %v1678_v5  ;;  %v2123_v3 = vpop.eup %1459  ;;  %v900_v13 = vmul.f32 %v1831_v36, %v1676_v4 }
 0x21f   :  { %1469 = vrcp.f32 %v736_v10  ;;  %v735_v37 = vmax.f32 %v713_v61, 1e-12  ;;  %v980_v18 = vmul.f32 2.0, %v584_v50  ;;  %v996_v28 = vmul.f32 %v1851_v49, %v1831_v36  ;;  %v2129_v15 = vpop.eup %1461 }
 0x220   :  { %1471 = vrcp.f32 %v879_v0  ;;  %v1009_v21 = vmul.f32 %v993_v60, %v977_v62  ;;  %v948_v32 = vmul.f32 %v1851_v49, %v932_v63  ;;  %v899_v5 = vmul.f32 %v1859_v57, %v1690_v11  ;;  %v2134_v45 = vpop.eup %1463  ;;  %v586_v0 = vpop.xlane.xlu0 %585 }
 0x221   :  { %1473 = vrcp.f32 %v735_v37  ;;  %v916_v10 = vmul.f32 %v1831_v36, %v900_v13  ;;  %v1012_v30 = vmul.f32 %v996_v28, %v980_v18  ;;  %v931_v4 = vmul.f32 %v1878_v12, %v1695_v14 }
 0x222   :  { %v995_v50 = vmul.f32 %v1878_v12, %v1859_v57  ;;  %v1025_v39 = vsub.f32 %v961_v29, %v1009_v21  ;;  %v915_v61 = vmul.f32 %v1859_v57, %v899_v5  ;;  %v979_v60 = vmul.f32 2.0, %v582_v17  ;;  %v592_v57 = vpop.xlane.xlu1 %591 }
 0x223   :  { %v934_v49 = vmul.f32 %v1920_v1, %v1718_v27  ;;  %v964_v11 = vadd.f32 %v948_v32, %v916_v10  ;;  %v947_v37 = vmul.f32 %v1878_v12, %v931_v4  ;;  %v902_v36 = vmul.f32 %v1907_v46, %v1714_v24 }
 0x224   :  { %v982_v18 = vmul.f32 2.0, %v588_v54  ;;  %v1042_v14 = vsel %vm1041_vm10, %v1025_v39, 0.0  ;;  %v1011_v62 = vmul.f32 %v995_v50, %v979_v60  ;;  %v998_v29 = vmul.f32 %v1920_v1, %v1907_v46  ;;  %v590_v4 = vpop.xlane.xlu0 %589 }
 0x225   :  { %v950_v63 = vmul.f32 %v1920_v1, %v934_v49  ;;  %v1044_v13 = vadd.f32 %v1043_v55, %v1042_v14  ;;  %v1028_v27 = vsub.f32 %v964_v11, %v1012_v30  ;;  %v963_v28 = vadd.f32 %v947_v37, %v915_v61 }
 0x226   :  { %v2151_v17 = vpop.eup %1465  ;;  %v918_v12 = vmul.f32 %v1907_v46, %v902_v36  ;;  %v1014_v24 = vmul.f32 %v998_v29, %v982_v18  ;;  %v901_v54 = vmul.f32 %v1946_v31, %v1737_v38  ;;  %v933_v32 = vmul.f32 %v1942_v25, %v1742_v40  ;;  %v596_v14 = vpop.xlane.xlu1 %595 }
 0x227   :  { %v2154_v21 = vpop.eup %1467  ;;  %v997_v1 = vmul.f32 %v1946_v31, %v1942_v25  ;;  %v1047_v5 = vsel %vm1041_vm10, %v1028_v27, 0.0  ;;  %v1027_v10 = vsub.f32 %v963_v28, %v1011_v62  ;;  %v981_v30 = vmul.f32 2.0, %v586_v0 }
 0x228   :  { %v966_v55 = vadd.f32 %v950_v63, %v918_v12  ;;  %v917_v46 = vmul.f32 %v1946_v31, %v901_v54  ;;  %v949_v39 = vmul.f32 %v1942_v25, %v933_v32  ;;  %v936_v38 = vmul.f32 %v1963_v41, %v1764_v56  ;;  %v594_v32 = vpop.xlane.xlu0 %593 }
 0x229   :  { %v2163_v50 = vpop.eup %1469  ;;  %v904_v40 = vmul.f32 %v1971_v59, %v1758_v52  ;;  %v1045_v60 = vsel %vm1041_vm10, %v1027_v10, 0.0  ;;  %v1013_v11 = vmul.f32 %v997_v1, %v981_v30  ;;  %v984_v0 = vmul.f32 2.0, %v592_v57 }
 0x22a   :  { %v2171_v61 = vpop.eup %1471  ;;  %v1030_v49 = vsub.f32 %v966_v55, %v1014_v24  ;;  %v1046_v36 = vadd.f32 %v1045_v60, %v1044_v13  ;;  %v965_v18 = vadd.f32 %v949_v39, %v917_v46  ;;  %v952_v31 = vmul.f32 %v1963_v41, %v936_v38  ;;  %v600_v46 = vpop.xlane.xlu1 %599 }
 0x22b   :  { %v2174_v37 = vpop.eup %1473  ;;  %v920_v25 = vmul.f32 %v1971_v59, %v904_v40  ;;  %v1000_v52 = vmul.f32 %v1971_v59, %v1963_v41  ;;  %v903_v62 = vmul.f32 %v1988_v22, %v1780_v6  ;;  %v935_v63 = vmul.f32 %v1975_v2, %v1786_v8 }
 0x22c   :  { %v1051_v56 = vsel %vm1041_vm10, %v1030_v49, 0.0  ;;  %v1048_v29 = vadd.f32 %v1047_v5, %v1046_v36  ;;  %v1029_v57 = vsub.f32 %v965_v18, %v1013_v11  ;;  %v999_v27 = vmul.f32 %v1988_v22, %v1975_v2  ;;  %v598_v18 = vpop.xlane.xlu0 %597 }
 0x22d   :  { %v968_v13 = vadd.f32 %v952_v31, %v920_v25  ;;  %v1016_v28 = vmul.f32 %v1000_v52, %v984_v0  ;;  %v919_v12 = vmul.f32 %v1988_v22, %v903_v62  ;;  %v951_v24 = vmul.f32 %v1975_v2, %v935_v63  ;;  %v2296_v0 = vld [vmem:[#allocation14_spill] sm:$0xff] }
 0x22e   :  { %v983_v54 = vmul.f32 2.0, %v590_v4  ;;  %v1049_v41 = vsel %vm1041_vm10, %v1029_v57, 0.0  ;;  %v938_v6 = vmul.f32 %v1993_v33, %v1814_v23  ;;  %v906_v8 = vmul.f32 %v2006_v48, %v1804_v20 }
 0x22f   :  { %v986_v59 = vmul.f32 2.0, %v596_v14  ;;  %v1050_v1 = vadd.f32 %v1049_v41, %v1048_v29  ;;  %v1032_v5 = vsub.f32 %v968_v13, %v1016_v28  ;;  %v967_v10 = vadd.f32 %v951_v24, %v919_v12  ;;  %v2297_v14 = vld [vmem:[#allocation13_spill] sm:$0xff]  ;;  %v2298_v24 = vld [vmem:[#allocation15_spill] sm:$0xff] }
 0x230   :  { %v1015_v55 = vmul.f32 %v999_v27, %v983_v54  ;;  %v954_v30 = vmul.f32 %v1993_v33, %v938_v6  ;;  %v922_v22 = vmul.f32 %v2006_v48, %v906_v8  ;;  %v1002_v2 = vmul.f32 %v2006_v48, %v1993_v33  ;;  %v604_v27 = vpop.xlane.xlu1 %603  ;;  %v2299_v8 = vld [vmem:[#allocation17_spill] sm:$0xff] }
 0x231   :  { %v905_v4 = vmul.f32 %v2039_v53, %v1829_v35  ;;  %v1055_v23 = vsel %vm1041_vm10, %v1032_v5, 0.0  ;;  %v1052_v39 = vadd.f32 %v1051_v56, %v1050_v1  ;;  %v937_v38 = vmul.f32 %v2030_v7, %v1838_v42  ;;  %v2300_v1 = vld [vmem:[#allocation16_spill] sm:$0xff] }
 0x232   :  { %v1031_v20 = vsub.f32 %v967_v10, %v1015_v55  ;;  %v970_v40 = vadd.f32 %v954_v30, %v922_v22  ;;  %v1018_v60 = vmul.f32 %v1002_v2, %v986_v59  ;;  %v1001_v11 = vmul.f32 %v2039_v53, %v2030_v7  ;;  %v602_v55 = vpop.xlane.xlu0 %601 }
 0x233   :  { %v921_v49 = vmul.f32 %v2039_v53, %v905_v4  ;;  %v953_v48 = vmul.f32 %v2030_v7, %v937_v38  ;;  %v985_v35 = vmul.f32 2.0, %v594_v32  ;;  %v940_v36 = vmul.f32 %v2050_v34, %v2296_v0 }
 0x234   :  { %v1053_v33 = vsel %vm1041_vm10, %v1031_v20, 0.0  ;;  %v1034_v25 = vsub.f32 %v970_v40, %v1018_v60  ;;  %v908_v42 = vmul.f32 %v2067_v51, %v2297_v14  ;;  %v988_v56 = vmul.f32 2.0, %v600_v46  ;;  %v608_v40 = vpop.xlane.xlu1 %607 }
 0x235   :  { %v1054_v31 = vadd.f32 %v1053_v33, %v1052_v39  ;;  %v969_v52 = vadd.f32 %v953_v48, %v921_v49  ;;  %v1017_v62 = vmul.f32 %v1001_v11, %v985_v35  ;;  %v956_v63 = vmul.f32 %v2050_v34, %v940_v36 }
 0x236   :  { %v1004_v53 = vmul.f32 %v2067_v51, %v2050_v34  ;;  %v1059_v7 = vsel %vm1041_vm10, %v1034_v25, 0.0  ;;  %v924_v57 = vmul.f32 %v2067_v51, %v908_v42  ;;  %v907_v13 = vmul.f32 %v2113_v43, %v1883_v19  ;;  %v2301_v42 = vld [vmem:[#allocation18_spill] sm:$0xff] }
 0x237   :  { %v1056_v29 = vadd.f32 %v1055_v23, %v1054_v31  ;;  %v1033_v28 = vsub.f32 %v969_v52, %v1017_v62  ;;  %v939_v54 = vmul.f32 %v2091_v26, %v2298_v24  ;;  %v1003_v32 = vmul.f32 %v2113_v43, %v2091_v26 }
 0x238   :  { %v1020_v12 = vmul.f32 %v1004_v53, %v988_v56  ;;  %v972_v41 = vadd.f32 %v956_v63, %v924_v57  ;;  %v923_v34 = vmul.f32 %v2113_v43, %v907_v13  ;;  %v987_v6 = vmul.f32 2.0, %v598_v18  ;;  %v606_v18 = vpop.xlane.xlu0 %605 }
 0x239   :  { %v942_v59 = vmul.f32 %v2123_v3, %v2299_v8  ;;  %v1057_v51 = vsel %vm1041_vm10, %v1033_v28, 0.0  ;;  %v955_v19 = vmul.f32 %v2091_v26, %v939_v54  ;;  %v910_v5 = vmul.f32 %v2129_v15, %v2300_v1 }
 0x23a   :  { %v990_v10 = vmul.f32 2.0, %v604_v27  ;;  %v1058_v30 = vadd.f32 %v1057_v51, %v1056_v29  ;;  %v1036_v22 = vsub.f32 %v972_v41, %v1020_v12  ;;  %v1019_v2 = vmul.f32 %v1003_v32, %v987_v6 }
 0x23b   :  { %v958_v4 = vmul.f32 %v2123_v3, %v942_v59  ;;  %v971_v46 = vadd.f32 %v955_v19, %v923_v34  ;;  %v926_v43 = vmul.f32 %v2129_v15, %v910_v5  ;;  %v1006_v23 = vmul.f32 %v2129_v15, %v2123_v3 }
 0x23c   :  { %v909_v39 = vmul.f32 %v2151_v17, %v1931_v9  ;;  %v1060_v26 = vadd.f32 %v1059_v7, %v1058_v30  ;;  %v941_v20 = vmul.f32 %v2134_v45, %v1936_v16  ;;  %v1005_v38 = vmul.f32 %v2151_v17, %v2134_v45 }
 0x23d   :  { %v1035_v60 = vsub.f32 %v971_v46, %v1019_v2  ;;  %v974_v49 = vadd.f32 %v958_v4, %v926_v43  ;;  %v1022_v11 = vmul.f32 %v1006_v23, %v990_v10  ;;  %v989_v35 = vmul.f32 2.0, %v602_v55 }
 0x23e   :  { %v925_v33 = vmul.f32 %v2151_v17, %v909_v39  ;;  %v957_v48 = vmul.f32 %v2134_v45, %v941_v20  ;;  %v944_v3 = vmul.f32 %v2154_v21, %v1961_v44  ;;  %v912_v9 = vmul.f32 %v2163_v50, %v1969_v58 }
 0x23f   :  { %v1063_v16 = vsel %vm1041_vm10, %v1036_v22, 0.0  ;;  %v1061_v15 = vsel %vm1041_vm10, %v1035_v60, 0.0  ;;  %v1038_v0 = vsub.f32 %v974_v49, %v1022_v11  ;;  %v992_v36 = vmul.f32 2.0, %v608_v40 }
 0x240   :  { %v1062_v31 = vadd.f32 %v1061_v15, %v1060_v26  ;;  %v973_v25 = vadd.f32 %v957_v48, %v925_v33  ;;  %v1021_v14 = vmul.f32 %v1005_v38, %v989_v35  ;;  %v1008_v45 = vmul.f32 %v2163_v50, %v2154_v21 }
 0x241   :  { %v960_v17 = vmul.f32 %v2154_v21, %v944_v3  ;;  %v928_v44 = vmul.f32 %v2163_v50, %v912_v9  ;;  %v911_v58 = vmul.f32 %v2174_v37, %v2004_v47  ;;  %v943_v56 = vmul.f32 %v2171_v61, %v2301_v42 }
 0x242   :  { %v1037_v52 = vsub.f32 %v973_v25, %v1021_v14  ;;  %v1007_v62 = vmul.f32 %v2174_v37, %v2171_v61  ;;  %v991_v63 = vmul.f32 2.0, %v606_v18  ;;  %v1064_v53 = vadd.f32 %v1063_v16, %v1062_v31 }
 0x243   :  { %v1024_v7 = vmul.f32 %v1008_v45, %v992_v36  ;;  %v927_v29 = vmul.f32 %v2174_v37, %v911_v58  ;;  %v959_v57 = vmul.f32 %v2171_v61, %v943_v56  ;;  %v976_v13 = vadd.f32 %v960_v17, %v928_v44 }
 0x244   :  { %v1065_v21 = vsel %vm1041_vm10, %v1037_v52, 0.0  ;;  %v1023_v50 = vmul.f32 %v1007_v62, %v991_v63  ;;  %v1067_v28 = vsel %vm1041_vm10, %v1038_v0, 0.0 }
 0x245   :  { %v975_v27 = vadd.f32 %v959_v57, %v927_v29  ;;  %v1066_v47 = vadd.f32 %v1065_v21, %v1064_v53  ;;  %v1040_v12 = vsub.f32 %v976_v13, %v1024_v7 }
 0x247   :  { %v1039_v24 = vsub.f32 %v975_v27, %v1023_v50  ;;  %v1068_v54 = vadd.f32 %v1067_v28, %v1066_v47  ;;  %v1071_v34 = vsel %vm1041_vm10, %v1040_v12, 0.0 }
 0x249   :  { %v1069_v32 = vsel %vm1041_vm10, %v1039_v24, 0.0 }
 0x24a   :  { %v1070_v41 = vadd.f32 %v1069_v32, %v1068_v54 }
 0x24c   :  { %v1072_v6 = vadd.f32 %v1071_v34, %v1070_v41 }
 0x24e   :  { %1073 = vadd.xlane.f32.xlu0 %v1072_v6 }
 0x2db   :  { %v1074_v37 = vpop.xlane.xlu0 %1073 }
 0x2dc   :  { %v1075_v61 = vrot.slane %v1074_v37, 4 }
 0x2de   :  { %v1076_v8 = vadd.f32 %v1075_v61, %v1074_v37 }
 0x2e0   :  { %v1077_v59 = vrot.slane %v1076_v8, 2 }
 0x2e2   :  { %v1078_v51 = vadd.f32 %v1077_v59, %v1076_v8 }
 0x2e4   :  { %v1079_v19 = vrot.slane %v1078_v51, 1 }
 0x2e6   :  { %v1080_v1 = vadd.f32 %v1079_v19, %v1078_v51 }
 0x2e8   :  { %1340 = vpush %v1080_v1 }
 0x319   :  { %s1341_s7 = spop %1340 }
 0x31a   :  { %v1082_v5 = vstv %s1341_s7 }
 0x31b   :  { %1083 = vst [vmem:[#allocation9] sm:$0xff] %v1082_v5 }
 0x31c   :  { %1530 = shalt.err (!%p1527_p6)
}
 0x31d   :  { %s1531_s11 = scalar_lea.hbm %s2278_s2, 128 }
 0x31e   :  { %p1532_p7 = scmp.ne.s32.totalorder %s2278_s2, %s1531_s11  ;;  %p1535_p8 = scmp.lt.u32.totalorder %s1531_s11, %s2278_s2 }
 0x320   :  { %p1537_p9 = pnand %p1535_p8, %p1532_p7 }
 0x322   :  { %1540 = shalt.err (!%p1537_p9)
}
 0x323   :  { %1093 = dma.vmem_to_hbm [thread:$0]  %s1091_s6, 128, %s2278_s2, [#allocation6]  }
 0x324   :  { %1545 = dma.done.wait [#allocation6], 128  }
 0x325   :  { %1546 = vsyncadd [#allocation6], 4294967168 }
 0x326   :  { %1097 = vsyncpa [#allocation5], 1 }
 0x327   :  { %1098 = vsyncpa [#allocation8], 1 }
 0x328   :  { %1099 = vsyncpa [#allocation6], 1 }

</bundles_post_ra>
